<compile_context>
chip_gen: v7x
topology: tpu7x:2x2x1
jax: 0.10.0
libtpu: 0.0.40
codegen_flags: <defaults>
</compile_context>

<pallas_src>
import functools
import math

import jax
import jax.numpy as jnp
from jax.experimental import pallas as pl
from jax.experimental.pallas import tpu as pltpu


_ACTIVATIONS = {
    None: lambda y: y,
    "Identity": lambda y: y,
    "Sigmoid": jax.nn.sigmoid,
    "ReLU": lambda y: jnp.maximum(y, 0.0),
    "Tanh": jnp.tanh,
    "GELU": jax.nn.gelu,
    "SiLU": jax.nn.silu,
    "Softplus": jax.nn.softplus,
    "ELU": jax.nn.elu,
    "LeakyReLU": lambda y: jnp.where(y >= 0, y, 0.01 * y),
}
# TODO(synk): other torch.nn activation names are not mapped; extend the table as needed.


def _apply_activation(y, activation):
    if activation not in _ACTIVATIONS:
        raise NotImplementedError(f"activation {activation!r}")
    return _ACTIVATIONS[activation](y)


def _conv1x1_vpu_kernel(x_ref, w_ref, b_ref, o_ref, *, activation):
    """Small-channel path: VPU broadcast-FMA loop, weights/bias as SMEM scalars.

    x_ref: VMEM (1, C_in, TM)   w_ref: SMEM (C_out, C_in), float32
    b_ref: SMEM (C_out,), f32   o_ref: VMEM (1, C_out, TM)
    """
    c_out, c_in = w_ref.shape
    x = x_ref[0].astype(jnp.float32)          # (C_in, TM), spatial on lanes
    tm = x.shape[-1]
    rows = []
    for co in range(c_out):
        acc = jnp.full((1, tm), b_ref[co], dtype=jnp.float32)
        for ci in range(c_in):
            acc = acc + w_ref[co, ci] * x[ci:ci + 1, :]
        rows.append(acc)
    y = jnp.concatenate(rows, axis=0)         # (C_out, TM)
    y = _apply_activation(y, activation)
    o_ref[0] = y.astype(o_ref.dtype)


def _conv1x1_mxu_kernel(x_ref, w_ref, b_ref, o_ref, *, activation):
    """Larger-channel path: MXU matmul, weights resident in VMEM.

    x_ref: VMEM (1, C_in, TM)   w_ref: VMEM (C_out, C_in)
    b_ref: VMEM (C_out, 1) f32  o_ref: VMEM (1, C_out, TM)
    """
    y = jnp.dot(w_ref[...], x_ref[0], preferred_element_type=jnp.float32)
    y = y + b_ref[...]                        # broadcast (C_out, 1) over lanes
    y = _apply_activation(y, activation)
    o_ref[0] = y.astype(o_ref.dtype)


def _choose_tile(hw, c_in, c_out, itemsize, tm_max):
    """Pick a spatial tile: big (to amortize grid overhead), lane-aligned, and
    within a VMEM budget that is safe on every TPU generation."""
    budget = 8 * 1024 * 1024                       # double-buffered in+out blocks
    per_col = 2 * (c_in + c_out) * itemsize        # bytes per spatial column (x2 buffers)
    cap = max(128, (budget // max(per_col, 1)) // 128 * 128)
    tm = min(tm_max, cap)
    if hw <= tm:
        return hw                                  # full-extent block: always legal
    return tm                                      # multiple of 128; ragged tail masked


def output_conv(x_nchw, weight, bias, activation=None, *, tm_max=8192):
    """Forward of torch.nn.Conv2d(C_in, C_out, kernel_size=1, padding=0)
    followed by an optional activation.

    x_nchw : (N, C_in, H, W)
    weight : (C_out, C_in, 1, 1)   (torch layout)
    bias   : (C_out,)
    """
    N, C_in, H, W = x_nchw.shape
    C_out = weight.shape[0]
    HW = H * W

    x = x_nchw.reshape(N, C_in, HW)                # pure view of NCHW memory
    w = weight.reshape(C_out, C_in)

    tm = _choose_tile(HW, C_in, C_out, x.dtype.itemsize, tm_max)
    grid = (N, pl.cdiv(HW, tm))

    x_spec = pl.BlockSpec((1, C_in, tm), lambda n, s: (n, 0, s))
    o_spec = pl.BlockSpec((1, C_out, tm), lambda n, s: (n, 0, s))

    # Small channel products -> cheap unrolled VPU FMA loop (no MXU padding waste,
    # no huge unroll).  Anything bigger -> MXU matmul.
    use_mxu = (C_in * C_out) > 32
    if use_mxu:
        kernel = functools.partial(_conv1x1_mxu_kernel, activation=activation)
        w_spec = pl.BlockSpec((C_out, C_in), lambda n, s: (0, 0))   # VMEM-resident
        b_spec = pl.BlockSpec((C_out, 1), lambda n, s: (0, 0))      # VMEM-resident
        w_arg = w
        b_arg = bias.reshape(C_out, 1).astype(jnp.float32)
    else:
        kernel = functools.partial(_conv1x1_vpu_kernel, activation=activation)
        w_spec = pl.BlockSpec(memory_space=pltpu.MemorySpace.SMEM)  # tiny scalars
        b_spec = pl.BlockSpec(memory_space=pltpu.MemorySpace.SMEM)
        w_arg = w.astype(jnp.float32)
        b_arg = bias.astype(jnp.float32)

    out = pl.pallas_call(
        kernel,
        out_shape=jax.ShapeDtypeStruct((N, C_out, HW), x_nchw.dtype),
        grid_spec=pltpu.PrefetchScalarGridSpec(
            num_scalar_prefetch=0,
            grid=grid,
            in_specs=[x_spec, w_spec, b_spec],
            out_specs=o_spec,
        ),
        compiler_params=pltpu.CompilerParams(
            dimension_semantics=("parallel", "parallel"),
        ),
    )(x, w_arg, b_arg)

    return out.reshape(N, C_out, H, W)             # pure view, no transpose


def init_output_conv_params(key, in_channels, out_channels):
    """Deterministic init matching torch.nn.Conv2d defaults (kaiming-uniform-ish)."""
    kw, kb = jax.random.split(key)
    fan_in = in_channels * 1 * 1
    bound_w = math.sqrt(1.0 / fan_in) * math.sqrt(3.0)  # kaiming_uniform(a=sqrt(5))
    weight = jax.random.uniform(
        kw, (out_channels, in_channels, 1, 1), jnp.float32, -bound_w, bound_w
    )
    bound_b = 1.0 / math.sqrt(fan_in)
    bias = jax.random.uniform(kb, (out_channels,), jnp.float32, -bound_b, bound_b)
    return weight, bias


if __name__ == "__main__":
    key = jax.random.PRNGKey(0)
    k_x, k_p = jax.random.split(key)

    N, C_in, H, W = 2, 4, 16, 16
    C_out = 3
    activation = "Sigmoid"

    x = jax.random.normal(k_x, (N, C_in, H, W), jnp.float32)
    weight, bias = init_output_conv_params(k_p, C_in, C_out)

    out = output_conv(x, weight, bias, activation=activation)
    out = jax.block_until_ready(out)

    # Reference in plain JAX (1x1 conv == per-pixel channel contraction).
    ref = jnp.einsum("nchw,oc->nohw", x, weight.reshape(C_out, C_in)) + bias[
        None, :, None, None
    ]
    ref = jax.nn.sigmoid(ref)

    assert out.shape == (N, C_out, H, W)
    assert jnp.allclose(out, ref, atol=1e-5, rtol=1e-5)

    print("KERNEL_OK")
</pallas_src>

<mosaic_0001>
module attributes {stable_mosaic.version = 11 : i64} {
  func.func @_conv1x1_vpu_kernel(%arg0: i32, %arg1: i32, %arg2: memref<1x4x256xf32, #tpu.memory_space<vmem>>, %arg3: memref<3x4xf32, #tpu.memory_space<smem>>, %arg4: memref<3xf32, #tpu.memory_space<smem>>, %arg5: memref<1x3x256xf32, #tpu.memory_space<vmem>>) attributes {dimension_semantics = [#tpu.dimension_semantics<parallel>, #tpu.dimension_semantics<parallel>], iteration_bounds = array<i64: 2, 1>, scalar_prefetch = 0 : i64, scratch_operands = 0 : i64, tpu.core_type = #tpu.core_type<tc>, window_params = [{transform_indices = @transform_0, window_bounds = array<i64: 1, 4, 256>}, {transform_indices = @transform_1, window_bounds = array<i64: 3, 4>}, {transform_indices = @transform_2, window_bounds = array<i64: 3>}, {transform_indices = @transform_3, window_bounds = array<i64: 1, 3, 256>}]} {
    %c0 = arith.constant 0 : index
    %c0_0 = arith.constant 0 : index
    %c0_1 = arith.constant 0 : index
    %0 = vector.load %arg2[%c0, %c0_0, %c0_1] : memref<1x4x256xf32, #tpu.memory_space<vmem>>, vector<1x4x256xf32>
    %1 = vector.shape_cast %0 : vector<1x4x256xf32> to vector<4x256xf32>
    %c0_2 = arith.constant 0 : index
    %2 = memref.load %arg4[%c0_2] : memref<3xf32, #tpu.memory_space<smem>>
    %3 = vector.broadcast %2 : f32 to vector<1x256xf32>
    %c0_3 = arith.constant 0 : index
    %c0_4 = arith.constant 0 : index
    %4 = memref.load %arg3[%c0_3, %c0_4] : memref<3x4xf32, #tpu.memory_space<smem>>
    %5 = vector.extract_strided_slice %1 {offsets = [0, 0], sizes = [1, 256], strides = [1, 1]} : vector<4x256xf32> to vector<1x256xf32>
    %6 = vector.broadcast %4 : f32 to vector<1x256xf32>
    %7 = arith.mulf %6, %5 : vector<1x256xf32>
    %8 = arith.addf %3, %7 : vector<1x256xf32>
    %c0_5 = arith.constant 0 : index
    %c1 = arith.constant 1 : index
    %9 = memref.load %arg3[%c0_5, %c1] : memref<3x4xf32, #tpu.memory_space<smem>>
    %10 = vector.extract_strided_slice %1 {offsets = [1, 0], sizes = [1, 256], strides = [1, 1]} : vector<4x256xf32> to vector<1x256xf32>
    %11 = vector.broadcast %9 : f32 to vector<1x256xf32>
    %12 = arith.mulf %11, %10 : vector<1x256xf32>
    %13 = arith.addf %8, %12 : vector<1x256xf32>
    %c0_6 = arith.constant 0 : index
    %c2 = arith.constant 2 : index
    %14 = memref.load %arg3[%c0_6, %c2] : memref<3x4xf32, #tpu.memory_space<smem>>
    %15 = vector.extract_strided_slice %1 {offsets = [2, 0], sizes = [1, 256], strides = [1, 1]} : vector<4x256xf32> to vector<1x256xf32>
    %16 = vector.broadcast %14 : f32 to vector<1x256xf32>
    %17 = arith.mulf %16, %15 : vector<1x256xf32>
    %18 = arith.addf %13, %17 : vector<1x256xf32>
    %c0_7 = arith.constant 0 : index
    %c3 = arith.constant 3 : index
    %19 = memref.load %arg3[%c0_7, %c3] : memref<3x4xf32, #tpu.memory_space<smem>>
    %20 = vector.extract_strided_slice %1 {offsets = [3, 0], sizes = [1, 256], strides = [1, 1]} : vector<4x256xf32> to vector<1x256xf32>
    %21 = vector.broadcast %19 : f32 to vector<1x256xf32>
    %22 = arith.mulf %21, %20 : vector<1x256xf32>
    %23 = arith.addf %18, %22 : vector<1x256xf32>
    %c1_8 = arith.constant 1 : index
    %24 = memref.load %arg4[%c1_8] : memref<3xf32, #tpu.memory_space<smem>>
    %25 = vector.broadcast %24 : f32 to vector<1x256xf32>
    %c1_9 = arith.constant 1 : index
    %c0_10 = arith.constant 0 : index
    %26 = memref.load %arg3[%c1_9, %c0_10] : memref<3x4xf32, #tpu.memory_space<smem>>
    %27 = vector.extract_strided_slice %1 {offsets = [0, 0], sizes = [1, 256], strides = [1, 1]} : vector<4x256xf32> to vector<1x256xf32>
    %28 = vector.broadcast %26 : f32 to vector<1x256xf32>
    %29 = arith.mulf %28, %27 : vector<1x256xf32>
    %30 = arith.addf %25, %29 : vector<1x256xf32>
    %c1_11 = arith.constant 1 : index
    %c1_12 = arith.constant 1 : index
    %31 = memref.load %arg3[%c1_11, %c1_12] : memref<3x4xf32, #tpu.memory_space<smem>>
    %32 = vector.extract_strided_slice %1 {offsets = [1, 0], sizes = [1, 256], strides = [1, 1]} : vector<4x256xf32> to vector<1x256xf32>
    %33 = vector.broadcast %31 : f32 to vector<1x256xf32>
    %34 = arith.mulf %33, %32 : vector<1x256xf32>
    %35 = arith.addf %30, %34 : vector<1x256xf32>
    %c1_13 = arith.constant 1 : index
    %c2_14 = arith.constant 2 : index
    %36 = memref.load %arg3[%c1_13, %c2_14] : memref<3x4xf32, #tpu.memory_space<smem>>
    %37 = vector.extract_strided_slice %1 {offsets = [2, 0], sizes = [1, 256], strides = [1, 1]} : vector<4x256xf32> to vector<1x256xf32>
    %38 = vector.broadcast %36 : f32 to vector<1x256xf32>
    %39 = arith.mulf %38, %37 : vector<1x256xf32>
    %40 = arith.addf %35, %39 : vector<1x256xf32>
    %c1_15 = arith.constant 1 : index
    %c3_16 = arith.constant 3 : index
    %41 = memref.load %arg3[%c1_15, %c3_16] : memref<3x4xf32, #tpu.memory_space<smem>>
    %42 = vector.extract_strided_slice %1 {offsets = [3, 0], sizes = [1, 256], strides = [1, 1]} : vector<4x256xf32> to vector<1x256xf32>
    %43 = vector.broadcast %41 : f32 to vector<1x256xf32>
    %44 = arith.mulf %43, %42 : vector<1x256xf32>
    %45 = arith.addf %40, %44 : vector<1x256xf32>
    %c2_17 = arith.constant 2 : index
    %46 = memref.load %arg4[%c2_17] : memref<3xf32, #tpu.memory_space<smem>>
    %47 = vector.broadcast %46 : f32 to vector<1x256xf32>
    %c2_18 = arith.constant 2 : index
    %c0_19 = arith.constant 0 : index
    %48 = memref.load %arg3[%c2_18, %c0_19] : memref<3x4xf32, #tpu.memory_space<smem>>
    %49 = vector.extract_strided_slice %1 {offsets = [0, 0], sizes = [1, 256], strides = [1, 1]} : vector<4x256xf32> to vector<1x256xf32>
    %50 = vector.broadcast %48 : f32 to vector<1x256xf32>
    %51 = arith.mulf %50, %49 : vector<1x256xf32>
    %52 = arith.addf %47, %51 : vector<1x256xf32>
    %c2_20 = arith.constant 2 : index
    %c1_21 = arith.constant 1 : index
    %53 = memref.load %arg3[%c2_20, %c1_21] : memref<3x4xf32, #tpu.memory_space<smem>>
    %54 = vector.extract_strided_slice %1 {offsets = [1, 0], sizes = [1, 256], strides = [1, 1]} : vector<4x256xf32> to vector<1x256xf32>
    %55 = vector.broadcast %53 : f32 to vector<1x256xf32>
    %56 = arith.mulf %55, %54 : vector<1x256xf32>
    %57 = arith.addf %52, %56 : vector<1x256xf32>
    %c2_22 = arith.constant 2 : index
    %c2_23 = arith.constant 2 : index
    %58 = memref.load %arg3[%c2_22, %c2_23] : memref<3x4xf32, #tpu.memory_space<smem>>
    %59 = vector.extract_strided_slice %1 {offsets = [2, 0], sizes = [1, 256], strides = [1, 1]} : vector<4x256xf32> to vector<1x256xf32>
    %60 = vector.broadcast %58 : f32 to vector<1x256xf32>
    %61 = arith.mulf %60, %59 : vector<1x256xf32>
    %62 = arith.addf %57, %61 : vector<1x256xf32>
    %c2_24 = arith.constant 2 : index
    %c3_25 = arith.constant 3 : index
    %63 = memref.load %arg3[%c2_24, %c3_25] : memref<3x4xf32, #tpu.memory_space<smem>>
    %64 = vector.extract_strided_slice %1 {offsets = [3, 0], sizes = [1, 256], strides = [1, 1]} : vector<4x256xf32> to vector<1x256xf32>
    %65 = vector.broadcast %63 : f32 to vector<1x256xf32>
    %66 = arith.mulf %65, %64 : vector<1x256xf32>
    %67 = arith.addf %62, %66 : vector<1x256xf32>
    %68 = tpu.concatenate %23, %45, %67 in 0 : vector<1x256xf32>, vector<1x256xf32>, vector<1x256xf32> -> vector<3x256xf32>
    %69 = arith.negf %68 : vector<3x256xf32>
    %70 = math.exp %69 : vector<3x256xf32>
    %cst = arith.constant 1.000000e+00 : f32
    %71 = vector.broadcast %cst : f32 to vector<3x256xf32>
    %72 = arith.addf %71, %70 : vector<3x256xf32>
    %73 = arith.divf %71, %72 : vector<3x256xf32>
    %c0_26 = arith.constant 0 : index
    %c0_27 = arith.constant 0 : index
    %c0_28 = arith.constant 0 : index
    %74 = vector.load %arg5[%c0_26, %c0_27, %c0_28] : memref<1x3x256xf32, #tpu.memory_space<vmem>>, vector<1x3x256xf32>
    %75 = vector.shape_cast %74 : vector<1x3x256xf32> to vector<3x256xf32>
    %76 = vector.shape_cast %73 : vector<3x256xf32> to vector<1x3x256xf32>
    tpu.vector_store %arg5[%c0_26, %c0_27, %c0_28], %76 {strides = array<i32>} : memref<1x3x256xf32, #tpu.memory_space<vmem>>, vector<1x3x256xf32>,
    return
  }
  func.func @transform_0(%arg0: i32, %arg1: i32) -> (i32, i32, i32) {
    %c0_i32 = arith.constant 0 : i32
    %c0_i32_0 = arith.constant 0 : i32
    return %arg0, %c0_i32, %arg1 : i32, i32, i32
  }
  func.func @transform_1(%arg0: i32, %arg1: i32) -> (i32, i32) {
    %c0_i32 = arith.constant 0 : i32
    %c0_i32_0 = arith.constant 0 : i32
    %c0_i32_1 = arith.constant 0 : i32
    return %c0_i32, %c0_i32_0 : i32, i32
  }
  func.func @transform_2(%arg0: i32, %arg1: i32) -> i32 {
    %c0_i32 = arith.constant 0 : i32
    %c0_i32_0 = arith.constant 0 : i32
    return %c0_i32 : i32
  }
  func.func @transform_3(%arg0: i32, %arg1: i32) -> (i32, i32, i32) {
    %c0_i32 = arith.constant 0 : i32
    %c0_i32_0 = arith.constant 0 : i32
    return %arg0, %c0_i32, %arg1 : i32, i32, i32
  }
}

</mosaic_0001>

<bundles_post_ra>
// kernel: tpu_custom_call.1
= control target key start
LH: loop header
LB: loop body
LE: loop exit
PB: predicated region body
PF: predicated region fallthrough
CT: control target
= control target key end

     0   :  { %8 = vsyncpa [#allocation3], 0  ;;  %s970_s0 = inlined_call_operand.hbm [shape: f32[2,4,256], index: 0, kind: input, shape index: {}]   ;;  %s971_s1 = inlined_call_operand.hbm [shape: f32[3,4], index: 1, kind: input, shape index: {}]   ;;  %s972_s2 = inlined_call_operand.vmem [shape: f32[3], index: 2, kind: input, shape index: {}]   ;;  %s973_s3 = inlined_call_operand.vmem [shape: f32[2,3,256], index: 3, kind: output, shape index: {}]  }
   0x1   :  { %10 = vsyncpa [#allocation3 + $0x1], 0 }
   0x2   :  { %11 = vsyncpa [#allocation4], 0 }
   0x3   :  { %12 = vsyncpa [#allocation5], 0  ;;  %s776_s12 = smov 0   ;;  %s778_s13 = smov 0  }
   0x4   :  { %s780_s14 = smov 0   ;;  %s782_s15 = smov 0  }
   0x5   :  { %s784_s16 = smov 0   ;;  %s786_s17 = smov 0  }
   0x6 LB: > { %s508_s18 = sadd.s32 4294967295, %s751_s17   ;;  %p52_p0 = scmp.ne.s32.totalorder %s735_s13, %s731_s12  ;;  %s751_s17 = sphi %s786_s17, %s18_s17   ;;  %s747_s16 = sphi %s784_s16, %s989_s16   ;;  %s743_s15 = sphi %s782_s15, %s988_s15   ;;  %s739_s14 = sphi %s780_s14, %s987_s14   ;;  %s735_s13 = sphi %s778_s13, %s986_s13   ;;  %s731_s12 = sphi %s776_s12, %s985_s12  }
   0x7   : > { %p806_p1 = scmp.eq.s32.totalorder %s508_s18, 0  ;;  %p510_p2 = scmp.ge.s32.totalorder %s751_s17, 1 }
   0x8   : > { %p133_p3 = scmp.lt.s32.totalorder %s751_s17, 3  ;;  %s155_s24 = sshll.u32 %s972_s2, 4  ;;  %s156_s24 = int_to_ptr.vmem [resolvable:$true] %s155_s24 }
   0x9   : > { %s977_s19 = scalar_select %p806_p1, 1, 0 }
   0xa   : > { %p814_p4 = por %p806_p1, %p52_p0  ;;  %p818_p5 = pnand %p510_p2, %p133_p3 }
   0xb   : > { %s30_s26 = sadd.s32 1, %s747_s16  ;;  %s635_s30 = scalar_lea.hbm %s971_s1, 64 }
   0xc   : > { %s978_s20 = scalar_select %p814_p4, 1, 0 }
   0xd   : > { %p561_p6 = pneg %p818_p5  ;;  %p834_p8 = scmp.ge.s32.totalorder %s30_s26, 2 }
   0xe   : > { %p636_p9 = scmp.ne.s32.totalorder %s971_s1, %s635_s30  ;;  %p642_p13 = scmp.lt.u32.totalorder %s635_s30, %s971_s1 }
   0xf   : > { %p829_p7 = pnand %p561_p6, %p806_p1 }
  0x11   : > { %p637_p10 = pneg %p829_p7 }
  0x13   : > { %p638_p11 = pnand %p637_p10, %p636_p9 }
  0x15   : > { %p639_p12 = pneg %p638_p11 }
  0x17   : > { %p644_p0 = pnand %p642_p13, %p639_p12 }
  0x19   : > { %647 = shalt.err (!%p644_p0)
}
  0x1a   : > { %s753_s8 = smov [#allocation6]   ;;  %s648_s11 = scalar_lea.vmem %s156_s24, 16 }
  0x1b   : > { %564 = dma.hbm_to_smem (!%p829_p7), %s971_s1, 64, %s753_s8, [#allocation4]  }
  0x1c   : > { %p649_p2 = scmp.ne.s32.totalorder %s156_s24, %s648_s11  ;;  %p656_p1 = scmp.lt.s32.totalorder %s156_s24, %s156_s24 }
  0x1d   : > { %p657_p9 = scmp.lt.s32.totalorder %s648_s11, %s648_s11 }
  0x1e   : > { %p651_p3 = pnand %p649_p2, %p637_p10 }
  0x1f   : > { %p658_p11 = por %p657_p9, %p656_p1 }
  0x20   : > { %p652_p6 = pneg %p651_p3 }
  0x22   : > { %p659_p4 = pnand %p658_p11, %p652_p6 }
  0x24   : > { %662 = shalt.err (!%p659_p4)
}
  0x25   : > { %s754_s12 = smov [#allocation7]   ;;  %s991_s26 = smov (%p834_p8, %s30_s26), 0 }
  0x26   : > { %567 = dma.vmem_to_smem (!%p829_p7), %s156_s24, 16, %s754_s12, [#allocation5]  }
  0x27   : > { %s39_s18 = sadd.s32 1, %s739_s14  ;;  %p46_p1 = scmp.ne.s32.totalorder %s739_s14, %s735_s13 }
  0x28   : > { %s34_s22 = ssub.s32 %s747_s16, %s991_s26  ;;  %p47_p4 = scmp.eq.s32.totalorder %s751_s17, 0 }
  0x29   : > { %p37_p10 = scmp.eq.s32.totalorder %s34_s22, 0  ;;  %p574_p12 = scmp.lt.s32.totalorder %s751_s17, 2 }
  0x2a   : > { %p48_p13 = por %p47_p4, %p46_p1  ;;  %s166_s23 = sand.u32 1, %s739_s14  }
  0x2b   : > { %s869_s25 = scalar_select %p37_p10, %s739_s14, %s39_s18  }
  0x2c   : > { %s514_s28 = sshll.u32 %s166_s23, 3  ;;  %s549_s29 = sshll.u32 %s747_s16, 7 }
  0x2d   : > { %s875_s24 = scalar_lea.hbm %s970_s0, %s549_s29  ;;  %s170_s27 = scalar_lea.vmem [#allocation2], %s514_s28 }
  0x2e   : > { %s180_s5 = sshll.u32 %s170_s27, 4  ;;  %p879_p7 = pnand %p574_p12, %p48_p13  ;;  %s877_s5 = int_to_ptr.vmem [resolvable:$true] %s180_s5 }
  0x2f   : > { %s167_s7 = scalar_lea.sflag [#allocation3], %s166_s23  ;;  %s663_s8 = scalar_lea.hbm %s875_s24, 128 }
  0x30   : > { %p664_p8 = scmp.ne.s32.totalorder %s875_s24, %s663_s8  ;;  %p665_p0 = pneg %p879_p7 }
  0x31   : > { %s668_s11 = scalar_lea.hbm %s970_s0, 256  ;;  %p669_p6 = scmp.lt.u32.totalorder %s875_s24, %s970_s0 }
  0x32   : > { %p666_p2 = pnand %p665_p0, %p664_p8  ;;  %p670_p9 = scmp.lt.u32.totalorder %s668_s11, %s663_s8 }
  0x33   : > { %p672_p1 = scmp.lt.u32.totalorder %s663_s8, %s875_s24 }
  0x34   : > { %p667_p3 = pneg %p666_p2  ;;  %p671_p11 = por %p670_p9, %p669_p6 }
  0x36   : > { %p673_p4 = por %p672_p1, %p671_p11 }
  0x38   : > { %p674_p10 = pnand %p673_p4, %p667_p3 }
  0x3a   : > { %677 = shalt.err (!%p674_p10)
}
  0x3b   : > { %s678_s22 = scalar_lea.vmem %s877_s5, 128  ;;  %s755_s23 = smov [#allocation2]  }
  0x3c   : > { %p679_p12 = scmp.ne.s32.totalorder %s877_s5, %s678_s22  ;;  %s683_s28 = sshll.u32 %s755_s23, 4  ;;  %s684_s28 = int_to_ptr.vmem [resolvable:$false] %s683_s28 }
  0x3d   : > { %s685_s29 = scalar_lea.vmem %s684_s28, 256  ;;  %p686_p2 = scmp.lt.s32.totalorder %s877_s5, %s684_s28 }
  0x3e   : > { %p681_p13 = pnand %p679_p12, %p665_p0  ;;  %p687_p6 = scmp.lt.s32.totalorder %s685_s29, %s678_s22 }
  0x40   : > { %p682_p8 = pneg %p681_p13  ;;  %p688_p9 = por %p687_p6, %p686_p2 }
  0x42   : > { %p689_p11 = pnand %p688_p9, %p682_p8 }
  0x44   : > { %692 = shalt.err (!%p689_p11)
}
  0x45   : > { %571 = dma.hbm_to_vmem [thread:$0]  (!%p879_p7), %s875_s24, 128, %s877_s5, %s167_s7  }
  0x46   : > { %189 = sbr.rel (%p818_p5) target bundleno = 142 (0x8e), region = 32  ;;  %s191_s30 = sand.u32 (!%p818_p5), 1, %s735_s13  }
  0x47   : > { %s518_s4 = sshll.u32 (!%p818_p5), %s191_s30, 3  ;;  %s192_s27 = scalar_lea.sflag (!%p818_p5), [#allocation3], %s191_s30 }
  0x48   : > { %s195_s8 = scalar_lea.vmem (!%p818_p5), [#allocation2], %s518_s4  ;;  %p983_p0 = scmp.ne.s32.totalorder (!%p818_p5), %s978_s20, 0 }
  0x4d   : > { %718 = dma.done.wait (%p983_p0), %s192_s27, 128  }
  0x4e   : > { %720 = vsyncadd (%p983_p0), %s192_s27, 4294967168  ;;  %p984_p3 = scmp.ne.s32.totalorder %s977_s19, 0 }
  0x50   : > { %722 = dma.done.wait (%p984_p3), [#allocation4], 64  }
  0x51   : > { %724 = vsyncadd (%p984_p3), [#allocation4], 4294967232 }
  0x52   : > { %726 = dma.done.wait (%p984_p3), [#allocation5], 16  }
  0x53   : > { %728 = vsyncadd (%p984_p3), [#allocation5], 4294967280 }
  0x54   : > { %208 = sfence }
  0x55   : > { %s243_s21 = sld [smem:[#allocation7]]  ;;  %s523_s5 = sld [smem:[#allocation6 + $0x1]]  ;;  %v334_v0 = vlaneseq  ;;  %v242_v1 = vld [vmem:[%s195_s8] sm:$0xff]  ;;  %vm366_vm0 = vcmask 1040384   ;;  %vm369_vm1 = vcmask 1041408  }
  0x56   : > { %s245_s24 = sld [smem:[#allocation6]]  ;;  %s525_s6 = sld [smem:[#allocation6 + $0x2]] }
  0x57   : > { %s527_s7 = sld [smem:[#allocation6 + $0x3]]  ;;  %s923_s20 = sld [smem:[#allocation7 + $0x1]]  ;;  %v335_v5 = vshrl.u32 %v334_v0, 7 }
  0x58   : > { %s530_s9 = sld [smem:[#allocation6 + $0x80]]  ;;  %s925_s10 = sld [smem:[#allocation6 + $0x81]] }
  0x59   : > { %s927_s11 = sld [smem:[#allocation6 + $0x82]]  ;;  %s535_s19 = sld [smem:[#allocation6 + $0x83]]  ;;  %v336_v16 = vsub.s32 0, %v335_v5  ;;  %v340_v36 = vsub.s32 4, %v335_v5 }
  0x5a   : > { %s929_s12 = sld [smem:[#allocation7 + $0x2]]  ;;  %s931_s18 = sld [smem:[#allocation6 + $0x100]] }
  0x5b   : > { %v244_v2 = vstv %s243_s21  ;;  %v250_v4 = vstv %s523_s5  ;;  %s933_s22 = sld [smem:[#allocation6 + $0x101]]  ;;  %s935_s23 = sld [smem:[#allocation6 + $0x102]] }
  0x5c   : > { %v246_v3 = vstv %s245_s24  ;;  %v251_v7 = vmul.f32 %v250_v4, %v242_v1  ;;  %v258_v8 = vstv %s525_s6  ;;  %s937_s28 = sld [smem:[#allocation6 + $0x103]]  ;;  %p233_p5 = scmp.lt.s32.totalorder %s743_s15, 1 }
  0x5d   : > { %v247_v6 = vmul.f32 %v246_v3, %v242_v1  ;;  %v266_v9 = vstv %s527_s7  ;;  %v259_v12 = vmul.f32 %v258_v8, %v242_v1  ;;  %v274_v14 = vstv %s923_s20 }
  0x5e   : > { %v524_v11 = vrot.slane %v251_v7, 9  ;;  %v267_v13 = vmul.f32 %v266_v9, %v242_v1  ;;  %v276_v15 = vstv %s530_s9  ;;  %v280_v21 = vstv %s925_s10  ;;  %s993_s15 = smov (!%p233_p5, %s743_s15), 1 }
  0x5f   : > { %v248_v10 = vadd.f32 %v247_v6, %v244_v2  ;;  %v526_v18 = vrot.slane %v259_v12, 10  ;;  %v277_v20 = vmul.f32 %v276_v15, %v242_v1  ;;  %v288_v22 = vstv %s927_s11  ;;  %s550_s29 = sshll.u32 %s993_s15, 3 }
  0x60   : > { %v528_v19 = vrot.slane %v267_v13, 11  ;;  %v296_v23 = vstv %s535_s19  ;;  %v304_v24 = vstv %s929_s12  ;;  %v281_v27 = vmul.f32 %v280_v21, %v242_v1  ;;  %s240_s27 = scalar_lea.vmem %s973_s3, %s550_s29 }
  0x61   : > { %v256_v17 = vadd.f32 %v524_v11, %v248_v10  ;;  %v278_v26 = vadd.f32 %v277_v20, %v274_v14  ;;  %v289_v28 = vmul.f32 %v288_v22, %v242_v1  ;;  %v297_v29 = vmul.f32 %v296_v23, %v242_v1 }
  0x62   : > { %v306_v30 = vstv %s931_s18  ;;  %v310_v31 = vstv %s933_s22  ;;  %v318_v32 = vstv %s935_s23  ;;  %v532_v33 = vrot.slane %v281_v27, 9 }
  0x63   : > { %v264_v25 = vadd.f32 %v526_v18, %v256_v17  ;;  %v534_v34 = vrot.slane %v289_v28, 10  ;;  %v307_v35 = vmul.f32 %v306_v30, %v242_v1  ;;  %v311_v38 = vmul.f32 %v310_v31, %v242_v1 }
  0x64   : > { %v319_v39 = vmul.f32 %v318_v32, %v242_v1  ;;  %v326_v40 = vstv %s937_s28  ;;  %v286_v41 = vadd.f32 %v532_v33, %v278_v26  ;;  %v536_v42 = vrot.slane %v297_v29, 11 }
  0x65   : > { %v272_v37 = vadd.f32 %v528_v19, %v264_v25  ;;  %v308_v43 = vadd.f32 %v307_v35, %v304_v24  ;;  %v327_v44 = vmul.f32 %v326_v40, %v242_v1  ;;  %v540_v45 = vrot.slane %v311_v38, 9 }
  0x66   : > { %v542_v46 = vrot.slane %v319_v39, 10  ;;  %v294_v47 = vadd.f32 %v534_v34, %v286_v41 }
  0x67   : > { %v316_v48 = vadd.f32 %v540_v45, %v308_v43  ;;  %v544_v49 = vrot.slane %v327_v44, 11  ;;  %v337_v51 = vrot.slane %v272_v37, %v336_v16  ;;  %v341_v52 = vrot.slane %v272_v37, %v340_v36 }
  0x68   : > { %v302_v50 = vadd.f32 %v536_v42, %v294_v47 }
  0x69   : > { %v324_v53 = vadd.f32 %v542_v46, %v316_v48 }
  0x6a   : > { %v348_v54 = vrot.slane %v302_v50, %v336_v16  ;;  %v352_v55 = vrot.slane %v302_v50, %v340_v36 }
  0x6b   : > { %v332_v56 = vadd.f32 %v544_v49, %v324_v53 }
  0x6c   : > { %v367_v57 = vsel %vm366_vm0, %v337_v51, %v348_v54  ;;  %v368_v58 = vsel %vm366_vm0, %v341_v52, %v352_v55 }
  0x6d   : > { %v359_v59 = vrot.slane %v332_v56, %v336_v16  ;;  %v363_v60 = vrot.slane %v332_v56, %v340_v36 }
  0x6f   : > { %v370_v61 = vsel %vm369_vm1, %v367_v57, %v359_v59  ;;  %v371_v62 = vsel %vm369_vm1, %v368_v58, %v363_v60 }
  0x70   : > { %v545_v63 = vmul.f32 -1.442695, %v370_v61  ;;  %v546_v0 = vmul.f32 -1.442695, %v371_v62 }
  0x72   : > { %627 = vpow2.f32 %v545_v63 }
  0x73   : > { %629 = vpow2.f32 %v546_v0 }
  0x7c   : > { %v628_v1 = vpop.eup %627 }
  0x7d   : > { %v630_v2 = vpop.eup %629  ;;  %v378_v3 = vadd.f32 1.0, %v628_v1 }
  0x7e   : > { %v379_v4 = vadd.f32 1.0, %v630_v2 }
  0x7f   : > { %631 = vrcp.f32 %v378_v3 }
  0x80   : > { %633 = vrcp.f32 %v379_v4 }
  0x89   : > { %v632_v5 = vpop.eup %631 }
  0x8a   : > { %v634_v6 = vpop.eup %633 }
  0x8b   : > { %v386_v7 = vcombine.low %v632_v5, %v634_v6 }
  0x8d   : > { %388 = vst [vmem:[%s240_s27] sm:$0x77] %v386_v7 }
  0x8e PF: > { %s18_s17 = sadd.s32 1, %s751_s17   ;;  %s985_s12 = smov %s735_s13 }
  0x8f   : > { %p15_p7 = scmp.ge.s32.totalorder %s18_s17, 4   ;;  %s986_s13 = smov %s739_s14 }
  0x90   : > { %s987_s14 = smov %s869_s25  ;;  %s988_s15 = smov %s747_s16 }
  0x91   : > { %s989_s16 = smov %s991_s26  ;;  %17 = sbr.rel (!%p15_p7) target bundleno = 6 (0x6), region = 82 }
  0x98   :  { %419 = vsyncpa [#allocation3], 1 }
  0x99   :  { %421 = vsyncpa [#allocation3 + $0x1], 1 }
  0x9a   :  { %422 = vsyncpa [#allocation4], 1 }
  0x9b   :  { %424 = vsyncpa [#allocation4 + $0x1], 1 }
  0x9c   :  { %425 = vsyncpa [#allocation5], 1 }
  0x9d   :  { %427 = vsyncpa [#allocation5 + $0x1], 1 }

</bundles_post_ra>
